<compile_context>
chip_gen: v7x
topology: tpu7x:2x2x1
jax: 0.10.0
libtpu: 0.0.40
codegen_flags: <defaults>
</compile_context>

<pallas_src>
import jax
import jax.numpy as jnp
from jax.experimental import pallas as pl
from jax.experimental.pallas import tpu as pltpu


def _mlp_kernel(x_ref, w1_ref, b1_ref, w2_ref, b2_ref, w3_ref, b3_ref, o_ref):
    x = x_ref[...]                                                    # (BT, D) bf16

    h1 = jnp.dot(x, w1_ref[...], preferred_element_type=jnp.float32) + b1_ref[...]
    h1 = jnp.maximum(h1, 0.0)                                         # ReLU on f32 acc

    h2 = jnp.dot(h1.astype(jnp.bfloat16), w2_ref[...],
                 preferred_element_type=jnp.float32) + b2_ref[...]
    h2 = jnp.maximum(h2, 0.0)

    # fc3: (BT,32) x (32,1) -> use VPU mul + XLU lane-reduce instead of an
    # N=1 MXU matmul (both units have slack in this memory-bound regime).
    y = jnp.sum(h2 * w3_ref[...], axis=-1, keepdims=True) + b3_ref[...]
    o_ref[...] = y.astype(o_ref.dtype)
    # NOTE: output is lane-width 1 -> masked vst; output bytes are tiny so the
    # lane-dense rewrite from the review is skipped as second-order.


def _round_up(n, m):
    return ((n + m - 1) // m) * m


def gesture_model_forward(x, params, *, block_rows=8192):
    """x: (B, in_feat*3) f32; params: w1(D,128) b1(1,128) w2(128,32) b2(1,32)
    w3(32,1) b3(1,1). Returns (B, 1) f32."""
    B, D = x.shape
    H1, H2 = 128, 32

    # Big batch tiles hit the HBM roofline (per-step overhead ~0.35us); an
    # (8192, 48) bf16 tile is ~0.75 MiB (1.5 MiB double-buffered) + ~25 KiB of
    # resident weights, well under even v7x's 32 MiB scoped VMEM default.
    BT = min(block_rows, _round_up(B, 8))
    grid = (pl.cdiv(B, BT),)

    # Cast the streamed/large operands to bf16; keep biases, w3 and the output f32.
    x_bf16 = x.astype(jnp.bfloat16)
    w1 = params["w1"].astype(jnp.bfloat16)
    w2 = params["w2"].astype(jnp.bfloat16)
    b1 = params["b1"].astype(jnp.float32)
    b2 = params["b2"].astype(jnp.float32)
    w3_row = params["w3"].reshape(1, H2).astype(jnp.float32)
    b3 = params["b3"].reshape(1, 1).astype(jnp.float32)

    def resident(shape):
        return pl.BlockSpec(shape, lambda i: (0, 0))   # VMEM-resident across grid steps

    cost = pl.CostEstimate(
        flops=2 * B * (D * H1 + H1 * H2 + H2),
        bytes_accessed=B * (D * 2 + 4)                       # stream x (bf16) + out (f32)
        + (D * H1 + H1 * H2) * 2                             # bf16 weights
        + (H1 + H2 + H2 + 1) * 4,                            # f32 biases + w3
        transcendentals=0,
    )

    return pl.pallas_call(
        _mlp_kernel,
        out_shape=jax.ShapeDtypeStruct((B, 1), jnp.float32),
        grid=grid,
        in_specs=[
            pl.BlockSpec((BT, D), lambda i: (i, 0)),         # x: streamed batch tiles
            resident((D, H1)),
            resident((1, H1)),
            resident((H1, H2)),
            resident((1, H2)),
            resident((1, H2)),
            resident((1, 1)),
        ],
        out_specs=pl.BlockSpec((BT, 1), lambda i: (i, 0)),
        compiler_params=pltpu.CompilerParams(
            dimension_semantics=("parallel",),               # shard batch across TCs on v7x
        ),
        cost_estimate=cost,
    )(x_bf16, w1, b1, w2, b2, w3_row, b3)


def init_params(in_feat, key):
    """Deterministic init mimicking nn.Linear's U(-1/sqrt(fan_in), 1/sqrt(fan_in))."""
    D = in_feat * 3
    ks = jax.random.split(key, 6)

    def lin(kw, kb, fan_in, fan_out):
        bound = 1.0 / jnp.sqrt(fan_in)
        w = jax.random.uniform(kw, (fan_in, fan_out), jnp.float32, -bound, bound)
        b = jax.random.uniform(kb, (1, fan_out), jnp.float32, -bound, bound)
        return w, b

    w1, b1 = lin(ks[0], ks[1], D, 128)
    w2, b2 = lin(ks[2], ks[3], 128, 32)
    w3, b3 = lin(ks[4], ks[5], 32, 1)
    return {"w1": w1, "b1": b1, "w2": w2, "b2": b2, "w3": w3, "b3": b3}


def reference_forward_f32(x, p):
    h1 = jnp.maximum(x @ p["w1"] + p["b1"], 0.0)
    h2 = jnp.maximum(h1 @ p["w2"] + p["b2"], 0.0)
    return h2 @ p["w3"] + p["b3"]


def reference_forward_bf16(x, p):
    # Mirrors the kernel's quantization: bf16 inputs/weights, f32 accumulate.
    xb = x.astype(jnp.bfloat16)
    w1b = p["w1"].astype(jnp.bfloat16)
    w2b = p["w2"].astype(jnp.bfloat16)
    h1 = jnp.maximum(
        jnp.dot(xb, w1b, preferred_element_type=jnp.float32) + p["b1"], 0.0)
    h2 = jnp.maximum(
        jnp.dot(h1.astype(jnp.bfloat16), w2b, preferred_element_type=jnp.float32)
        + p["b2"], 0.0)
    return jnp.sum(h2 * p["w3"].reshape(1, -1), axis=-1, keepdims=True) + p["b3"]


if __name__ == "__main__":
    key = jax.random.PRNGKey(0)
    k_x, k_p = jax.random.split(key)

    in_feat = 16                      # GestureModel(in_feat) -> input dim = in_feat * 3
    batch = 8
    x = jax.random.normal(k_x, (batch, in_feat * 3), jnp.float32)
    params = init_params(in_feat, k_p)

    out = jax.block_until_ready(gesture_model_forward(x, params))

    ref_bf16 = reference_forward_bf16(x, params)
    ref_f32 = reference_forward_f32(x, params)

    assert out.shape == (batch, 1)
    # Exact-quantization-matched reference (tight), plus loose sanity check vs pure f32.
    assert jnp.allclose(out, ref_bf16, atol=2e-3, rtol=2e-3), float(
        jnp.max(jnp.abs(out - ref_bf16)))
    assert jnp.allclose(out, ref_f32, atol=5e-2, rtol=5e-2)

    print("KERNEL_OK")
</pallas_src>

<mosaic_0001>
module attributes {stable_mosaic.version = 11 : i64} {
  func.func @_mlp_kernel(%arg0: i32, %arg1: memref<8x48xbf16, #tpu.memory_space<vmem>>, %arg2: memref<48x128xbf16, #tpu.memory_space<vmem>>, %arg3: memref<1x128xf32, #tpu.memory_space<vmem>>, %arg4: memref<128x32xbf16, #tpu.memory_space<vmem>>, %arg5: memref<1x32xf32, #tpu.memory_space<vmem>>, %arg6: memref<1x32xf32, #tpu.memory_space<vmem>>, %arg7: memref<1x1xf32, #tpu.memory_space<vmem>>, %arg8: memref<8x1xf32, #tpu.memory_space<vmem>>) attributes {dimension_semantics = [#tpu.dimension_semantics<parallel>], iteration_bounds = array<i64: 1>, scalar_prefetch = 0 : i64, scratch_operands = 0 : i64, tpu.core_type = #tpu.core_type<tc>, window_params = [{transform_indices = @transform_0, window_bounds = array<i64: 8, 48>}, {pipeline_mode = #tpu.pipeline_mode<synchronous>, transform_indices = @transform_1, window_bounds = array<i64: 48, 128>}, {pipeline_mode = #tpu.pipeline_mode<synchronous>, transform_indices = @transform_2, window_bounds = array<i64: 1, 128>}, {pipeline_mode = #tpu.pipeline_mode<synchronous>, transform_indices = @transform_3, window_bounds = array<i64: 128, 32>}, {pipeline_mode = #tpu.pipeline_mode<synchronous>, transform_indices = @transform_4, window_bounds = array<i64: 1, 32>}, {pipeline_mode = #tpu.pipeline_mode<synchronous>, transform_indices = @transform_5, window_bounds = array<i64: 1, 32>}, {pipeline_mode = #tpu.pipeline_mode<synchronous>, transform_indices = @transform_6, window_bounds = array<i64: 1, 1>}, {transform_indices = @transform_7, window_bounds = array<i64: 8, 1>}]} {
    %c0 = arith.constant 0 : index
    %c0_0 = arith.constant 0 : index
    %0 = vector.load %arg1[%c0, %c0_0] : memref<8x48xbf16, #tpu.memory_space<vmem>>, vector<8x48xbf16>
    %c0_1 = arith.constant 0 : index
    %c0_2 = arith.constant 0 : index
    %1 = vector.load %arg2[%c0_1, %c0_2] : memref<48x128xbf16, #tpu.memory_space<vmem>>, vector<48x128xbf16>
    %cst = arith.constant dense<0.000000e+00> : vector<8x128xf32>
    %2 = tpu.matmul %0, %1, %cst {dimension_numbers = #tpu.dot_dimension_numbers<[1], [0], [0], [1], [0, 0, 1, 1], [], []>} : vector<8x48xbf16>, vector<48x128xbf16>, vector<8x128xf32> -> vector<8x128xf32>
    %c0_3 = arith.constant 0 : index
    %c0_4 = arith.constant 0 : index
    %3 = vector.load %arg3[%c0_3, %c0_4] : memref<1x128xf32, #tpu.memory_space<vmem>>, vector<1x128xf32>
    %4 = vector.broadcast %3 : vector<1x128xf32> to vector<8x128xf32>
    %5 = arith.addf %2, %4 : vector<8x128xf32>
    %cst_5 = arith.constant 0.000000e+00 : f32
    %6 = vector.broadcast %cst_5 : f32 to vector<8x128xf32>
    %7 = arith.maximumf %5, %6 : vector<8x128xf32>
    %8 = arith.truncf %7 : vector<8x128xf32> to vector<8x128xbf16>
    %c0_6 = arith.constant 0 : index
    %c0_7 = arith.constant 0 : index
    %9 = vector.load %arg4[%c0_6, %c0_7] : memref<128x32xbf16, #tpu.memory_space<vmem>>, vector<128x32xbf16>
    %cst_8 = arith.constant dense<0.000000e+00> : vector<8x32xf32>
    %10 = tpu.matmul %8, %9, %cst_8 {dimension_numbers = #tpu.dot_dimension_numbers<[1], [0], [0], [1], [0, 0, 1, 1], [], []>} : vector<8x128xbf16>, vector<128x32xbf16>, vector<8x32xf32> -> vector<8x32xf32>
    %c0_9 = arith.constant 0 : index
    %c0_10 = arith.constant 0 : index
    %11 = vector.load %arg5[%c0_9, %c0_10] : memref<1x32xf32, #tpu.memory_space<vmem>>, vector<1x32xf32>
    %12 = vector.broadcast %11 : vector<1x32xf32> to vector<8x32xf32>
    %13 = arith.addf %10, %12 : vector<8x32xf32>
    %cst_11 = arith.constant 0.000000e+00 : f32
    %14 = vector.broadcast %cst_11 : f32 to vector<8x32xf32>
    %15 = arith.maximumf %13, %14 : vector<8x32xf32>
    %c0_12 = arith.constant 0 : index
    %c0_13 = arith.constant 0 : index
    %16 = vector.load %arg6[%c0_12, %c0_13] : memref<1x32xf32, #tpu.memory_space<vmem>>, vector<1x32xf32>
    %17 = vector.broadcast %16 : vector<1x32xf32> to vector<8x32xf32>
    %18 = arith.mulf %15, %17 : vector<8x32xf32>
    %cst_14 = arith.constant dense<0.000000e+00> : vector<8xf32>
    %19 = vector.multi_reduction <add>, %18, %cst_14 [1] : vector<8x32xf32> to vector<8xf32>
    %20 = vector.shape_cast %19 : vector<8xf32> to vector<8x1xf32>
    %c0_15 = arith.constant 0 : index
    %c0_16 = arith.constant 0 : index
    %21 = vector.load %arg7[%c0_15, %c0_16] : memref<1x1xf32, #tpu.memory_space<vmem>>, vector<1x1xf32>
    %22 = vector.broadcast %21 : vector<1x1xf32> to vector<8x1xf32>
    %23 = arith.addf %20, %22 : vector<8x1xf32>
    %c0_17 = arith.constant 0 : index
    %c0_18 = arith.constant 0 : index
    %24 = vector.load %arg8[%c0_17, %c0_18] : memref<8x1xf32, #tpu.memory_space<vmem>>, vector<8x1xf32>
    tpu.vector_store %arg8[%c0_17, %c0_18], %23 {strides = array<i32>} : memref<8x1xf32, #tpu.memory_space<vmem>>, vector<8x1xf32>,
    return
  }
  func.func @transform_0(%arg0: i32) -> (i32, i32) {
    %c0_i32 = arith.constant 0 : i32
    %c0_i32_0 = arith.constant 0 : i32
    return %arg0, %c0_i32 : i32, i32
  }
  func.func @transform_1(%arg0: i32) -> (i32, i32) {
    %c0_i32 = arith.constant 0 : i32
    %c0_i32_0 = arith.constant 0 : i32
    %c0_i32_1 = arith.constant 0 : i32
    return %c0_i32, %c0_i32_0 : i32, i32
  }
  func.func @transform_2(%arg0: i32) -> (i32, i32) {
    %c0_i32 = arith.constant 0 : i32
    %c0_i32_0 = arith.constant 0 : i32
    %c0_i32_1 = arith.constant 0 : i32
    return %c0_i32, %c0_i32_0 : i32, i32
  }
  func.func @transform_3(%arg0: i32) -> (i32, i32) {
    %c0_i32 = arith.constant 0 : i32
    %c0_i32_0 = arith.constant 0 : i32
    %c0_i32_1 = arith.constant 0 : i32
    return %c0_i32, %c0_i32_0 : i32, i32
  }
  func.func @transform_4(%arg0: i32) -> (i32, i32) {
    %c0_i32 = arith.constant 0 : i32
    %c0_i32_0 = arith.constant 0 : i32
    %c0_i32_1 = arith.constant 0 : i32
    return %c0_i32, %c0_i32_0 : i32, i32
  }
  func.func @transform_5(%arg0: i32) -> (i32, i32) {
    %c0_i32 = arith.constant 0 : i32
    %c0_i32_0 = arith.constant 0 : i32
    %c0_i32_1 = arith.constant 0 : i32
    return %c0_i32, %c0_i32_0 : i32, i32
  }
  func.func @transform_6(%arg0: i32) -> (i32, i32) {
    %c0_i32 = arith.constant 0 : i32
    %c0_i32_0 = arith.constant 0 : i32
    %c0_i32_1 = arith.constant 0 : i32
    return %c0_i32, %c0_i32_0 : i32, i32
  }
  func.func @transform_7(%arg0: i32) -> (i32, i32) {
    %c0_i32 = arith.constant 0 : i32
    %c0_i32_0 = arith.constant 0 : i32
    return %arg0, %c0_i32 : i32, i32
  }
}

</mosaic_0001>

<bundles_post_ra>
// kernel: tpu_custom_call.1
= control target key start
LH: loop header
LB: loop body
LE: loop exit
PB: predicated region body
PF: predicated region fallthrough
CT: control target
= control target key end

     0   :  { %v317_v0 = vmov 0.0   ;;  %vm318_vm0 = vmmov 0   ;;  %vm61_vm1 = vcmask 392192   ;;  %vm227_vm2 = vcmask 261120   ;;  %s410_s1 = inlined_call_operand.vmem [shape: bf16[48,128], index: 1, kind: input, shape index: {}]   ;;  %s411_s3 = inlined_call_operand.vmem [shape: bf16[128,32], index: 3, kind: input, shape index: {}]   ;;  %s412_s0 = inlined_call_operand.vmem [shape: bf16[8,48], index: 0, kind: input, shape index: {}]   ;;  %s413_s2 = inlined_call_operand.vmem [shape: f32[1,128], index: 2, kind: input, shape index: {}]   ;;  %s414_s6 = inlined_call_operand.<no memory space> [shape: f32[1,1], index: 6, kind: input, shape index: {}]   ;;  %s415_s4 = inlined_call_operand.vmem [shape: f32[1,32], index: 4, kind: input, shape index: {}]   ;;  %s416_s5 = inlined_call_operand.vmem [shape: f32[1,32], index: 5, kind: input, shape index: {}]   ;;  %s417_s7 = inlined_call_operand.vmem [shape: f32[8,1], index: 7, kind: output, shape index: {}]  }
   0x1   :  { %274 = vmatprep.subr.bf16.mxu0 %v317_v0  ;;  %v306_v1 = vld [vmem:[%s410_s1] sm:$0xff]   ;;  %280 = vmatprep.mubr.msk.bf16.mxu0 %vm318_vm0, %v317_v0  ;;  %v307_v2 = vld [vmem:[%s410_s1 + $0x8] sm:$0xff]   ;;  %v308_v4 = vld [vmem:[%s410_s1 + $0x10] sm:$0xff]   ;;  %v12_v21 = vstv %s414_s6  ;;  %vm239_vm3 = vcmask 7168  }
   0x2   :  { %284 = vmatprep.subr.bf16.mxu1 %v317_v0  ;;  %300 = vmatprep.mubr.msk.bf16.mxu1 %vm318_vm0, %v317_v0  ;;  %v309_v3 = vld [vmem:[%s411_s3] sm:$0xff]   ;;  %v310_v5 = vld [vmem:[%s411_s3 + $0x8] sm:$0xff]   ;;  %v311_v7 = vld [vmem:[%s411_s3 + $0x10] sm:$0xff]   ;;  %13 = vst [vmem:[#allocation2] sm:$0x1] %v12_v21 }
   0x3   :  { %275 = vmatpush3.bf16.msra.mxu0 %v306_v1  ;;  %285 = vmatpush3.bf16.msra.mxu1 %v309_v3  ;;  %v29_v6 = vld [vmem:[%s412_s0] sm:$0xf]  ;;  %v312_v8 = vld [vmem:[%s411_s3 + $0x18] sm:$0xff]   ;;  %v314_v10 = vld [vmem:[%s411_s3 + $0x28] sm:$0xff]  }
   0x4   :  { %276 = vmatprep.subr.bf16.mxu0 %v317_v0  ;;  %286 = vmatprep.subr.bf16.mxu1 %v317_v0  ;;  %v313_v9 = vld [vmem:[%s411_s3 + $0x20] sm:$0xff]   ;;  %v315_v11 = vld [vmem:[%s411_s3 + $0x30] sm:$0xff]   ;;  %v316_v12 = vld [vmem:[%s411_s3 + $0x38] sm:$0xff]  }
   0x5   :  { %v245_v13 = vld [vmem:[%s413_s2] ss:$0 sm:$0xff] }
   0x6   :  { %v250_v22 = vld [vmem:[%s415_s4] ss:$0 sm:$0xff] }
   0x7   :  { %277 = vmatpush3.bf16.msra.mxu0 %v307_v2  ;;  %287 = vmatpush3.bf16.msra.mxu1 %v310_v5  ;;  %v259_v27 = vld [vmem:[%s416_s5] ss:$0 sm:$0xff] }
   0x8   :  { %278 = vmatprep.subr.bf16.mxu0 %v317_v0  ;;  %288 = vmatprep.subr.bf16.mxu1 %v317_v0 }
   0x9   :  { %v260_v32 = vld [vmem:[#allocation2] ss:$0 sm:$0xff] }
   0xb   :  { %279 = vmatpush3.bf16.msra.mxu0 %v308_v4  ;;  %289 = vmatpush3.bf16.msra.mxu1 %v311_v7 }
   0xc   :  { %290 = vmatprep.subr.bf16.mxu1 %v317_v0 }
   0xe   :  { %281 = vmatmul.mubr.msk.bf16.vlgmr.msra.gmra.mrb[0].mxu0 %vm61_vm1, %v29_v6 }
   0xf   :  { %291 = vmatpush3.bf16.msra.mxu1 %v312_v8 }
  0x10   :  { %292 = vmatprep.subr.bf16.mxu1 %v317_v0 }
  0x13   :  { %293 = vmatpush3.bf16.msra.mxu1 %v313_v9 }
  0x14   :  { %294 = vmatprep.subr.bf16.mxu1 %v317_v0 }
  0x17   :  { %295 = vmatpush3.bf16.msra.mxu1 %v314_v10 }
  0x18   :  { %296 = vmatprep.subr.bf16.mxu1 %v317_v0 }
  0x1b   :  { %297 = vmatpush3.bf16.msra.mxu1 %v315_v11 }
  0x1c   :  { %298 = vmatprep.subr.bf16.mxu1 %v317_v0 }
  0x1f   :  { %299 = vmatpush3.bf16.msra.mxu1 %v316_v12 }
  0xe1   :  { %v99_v14 = vpop.f32.mrb[0].mxu0 }
  0xe2   :  { %v100_v15 = vadd.f32 %v245_v13, %v99_v14  ;;  %v282_v16 = vpop.f32.mrb[1].mxu0 }
  0xe3   :  { %v102_v17 = vpop.f32.mrb[2].mxu0 }
  0xe4   :  { %v105_v18 = vmax.f32 %v100_v15, 0.0  ;;  %v283_v19 = vpop.f32.mrb[3].mxu0 }
  0xe6   :  { %v106_v20 = vpack.c.bf16 %v105_v18, %v105_v18 }
  0xe8   :  { %301 = vmatmul.mubr.bf16.vlgmr.msra.gmra.mrb[0].mxu1 %v106_v20 }
 0x1bb   :  { %v212_v23 = vpop.f32.mrb[0].mxu1 }
 0x1bc   :  { %v213_v24 = vadd.f32 %v250_v22, %v212_v23  ;;  %v302_v25 = vpop.f32.mrb[1].mxu1 }
 0x1bd   :  { %v215_v26 = vpop.f32.mrb[2].mxu1 }
 0x1be   :  { %v218_v28 = vmax.f32 %v213_v24, 0.0  ;;  %v303_v29 = vpop.f32.mrb[3].mxu1 }
 0x1c0   :  { %v226_v30 = vmul.f32 %v259_v27, %v218_v28 }
 0x1c2   :  { %v228_v31 = vsel %vm227_vm2, %v226_v30, 0.0 }
 0x1c3   :  { %229 = vadd.xlane.f32.xlu0 %v228_v31 }
 0x250   :  { %v230_v33 = vpop.xlane.xlu0 %229 }
 0x251   :  { %v238_v34 = vadd.f32 %v260_v32, %v230_v33 }
 0x253   :  { %240 = vst.msk [vmem:[%s417_s7] sm:$0xff] %vm239_vm3, %v238_v34 }

</bundles_post_ra>
